<compile_context>
chip_gen: v7x
topology: tpu7x:2x2x1
jax: 0.10.0
libtpu: 0.0.40
codegen_flags: <defaults>
</compile_context>

<pallas_src>
import functools

import numpy as np
import jax
import jax.numpy as jnp
from jax import lax
from jax.experimental import pallas as pl
from jax.experimental.pallas import tpu as pltpu


# ----------------------------------------------------------------------------
# Config (matches the nn.Module's __init__)
# ----------------------------------------------------------------------------
CFG = dict(
    seq_len=16,
    pred_len=0,
    top_k=2,
    d_model=32,
    d_ff=32,
    num_kernels=6,
    num_features=4,
    e_layers=2,
    num_classes=3,
)


# ----------------------------------------------------------------------------
# Static, layer-independent constants (hoisted out of the layer loop)
# ----------------------------------------------------------------------------
def build_period_consts(cfg, batch):
    total = cfg["seq_len"] + cfg["pred_len"]
    K = cfg["num_kernels"]
    C = cfg["d_model"]
    F = cfg["d_ff"]
    left = (K - 1) // 2                       # PyTorch 'same' split: (2, 3)
    nf = total // 2 + 1                       # rFFT bins
    cand_periods = sorted({total // f for f in range(1, nf)})
    P = len(cand_periods)
    L_max = max(-(-total // p) * p for p in cand_periods)
    R = batch * L_max                         # uniform row count for all branches

    # frequency index -> candidate index (top-k never picks freq 0).
    cand_map = np.zeros((nf,), np.int32)
    for f in range(1, nf):
        cand_map[f] = cand_periods.index(total // f)

    # Per-candidate tap-validity masks, pre-expanded to the full im2col lane
    # width so the kernel applies them with ONE wide multiply per conv.
    t = np.arange(R) % L_max
    j = np.arange(K)
    mask1 = np.zeros((P, R, K * C), np.float32)
    mask2 = np.zeros((P, R, K * F), np.float32)
    for ci, p in enumerate(cand_periods):
        w = t % p
        src = w[:, None] - left + j[None, :]
        valid = ((src >= 0) & (src < p)).astype(np.float32)     # (R, K)
        mask1[ci] = np.repeat(valid, C, axis=1)                 # col = j*C + c
        mask2[ci] = np.repeat(valid, F, axis=1)                 # col = j*F + f
    return dict(total=total, K=K, C=C, F=F, left=left, nf=nf,
                cand_periods=cand_periods, P=P, L_max=L_max, R=R,
                cand_map=jnp.asarray(cand_map),
                mask1=jnp.asarray(mask1), mask2=jnp.asarray(mask2))


# ----------------------------------------------------------------------------
# Device-side FFT_for_Period (no host sync, fully jittable)
# ----------------------------------------------------------------------------
def fft_topk(x, k):
    """Returns (top-k frequency indices (kk,), amplitude weights (B, kk))."""
    xf = jnp.fft.rfft(x, axis=1)                       # (B, nf, N) complex64
    amp = jnp.abs(xf)
    freq = amp.mean(axis=0).mean(axis=-1)              # (nf,)
    # Reference zeroes the DC bin; -1 additionally keeps it strictly below any
    # real (>= 0) amplitude.
    freq = freq.at[0].set(-1.0)
    nf = freq.shape[0]
    kk = max(1, min(k, nf - 1))
    _, top_idx = lax.top_k(freq, kk)                   # stays on device
    pw = jnp.take(amp.mean(axis=-1), top_idx, axis=1)  # (B, kk)
    return top_idx, pw


# ----------------------------------------------------------------------------
# Pallas kernel: one TimesBlock layer = top-k (conv1 -> ReLU -> conv2) branches
# with in-kernel softmax-weighted accumulation.
# ----------------------------------------------------------------------------
def _timesblock_kernel(sel_ref,                       # scalar prefetch (unused in body)
                       xslab_ref, m1_ref, m2_ref,
                       w1_ref, b1_ref, w2_ref, b2_ref, wr_ref,
                       o_ref, hext_ref, *, K, left, R):
    """Grid axis = selected branch i (reduction -> "arbitrary").

    xslab_ref: (R, K*C)   branch-independent im2col slab of the padded input.
    m1_ref   : (R, K*C)   this branch's tap mask, pre-expanded (selected via
                          scalar-prefetched candidate index in the index_map).
    m2_ref   : (R, K*F)   same mask expanded for the d_ff intermediate.
    w1_ref   : (K*C, F)   bf16, im2col-ordered (row j*C + c).
    w2_ref   : (K*F, C)   bf16.
    wr_ref   : (R, C)     per-row softmax weight of this branch.
    o_ref    : (R, C)     f32 accumulator (same block for every grid step).
    hext_ref : (R+K-1, F) VMEM scratch; pad rows stay zero after step-0 init.
    """
    i = pl.program_id(0)

    @pl.when(i == 0)
    def _init():
        o_ref[...] = jnp.zeros_like(o_ref)
        hext_ref[...] = jnp.zeros_like(hext_ref)

    # conv1: one wide mask multiply, one depth-K*C MXU matmul (bf16, f32 acc).
    a1 = xslab_ref[...] * m1_ref[...]
    h = jnp.dot(a1.astype(jnp.bfloat16), w1_ref[...],
                preferred_element_type=jnp.float32) + b1_ref[...]
    h = jnp.maximum(h, 0.0)                                     # (R, F), VMEM only

    # conv2 im2col: write h into the pre-zeroed extended scratch and take K
    # static row-shifted views (no value-level zero-row concatenate).
    hext_ref[pl.ds(left, R), :] = h
    a2 = jnp.concatenate([hext_ref[pl.ds(j, R), :] for j in range(K)], axis=1)
    a2 = a2 * m2_ref[...]
    y = jnp.dot(a2.astype(jnp.bfloat16), w2_ref[...],
                preferred_element_type=jnp.float32) + b2_ref[...]

    # Softmax-weighted accumulation; output block is resident across the grid
    # and written back to HBM once at the end.
    o_ref[...] += wr_ref[...] * y


def times_block(h, lp, pc, cfg):
    """One TimesBlock layer in a single pallas_call over the top-k branches."""
    B, T, _ = h.shape
    K, left, R, L_max = pc["K"], pc["left"], pc["R"], pc["L_max"]
    C, F, total = pc["C"], pc["F"], pc["total"]

    top_idx, pw = fft_topk(h, cfg["top_k"])           # (kk,), (B, kk)
    kk = top_idx.shape[0]
    sel = pc["cand_map"][top_idx].astype(jnp.int32)   # candidate index per branch
    pw = jax.nn.softmax(pw, axis=1)                   # (B, kk)
    wrow = jnp.repeat(pw.T, L_max, axis=1)            # (kk, R): row -> batch weight
    wrow = jnp.broadcast_to(wrow[:, :, None], (kk, R, C)).astype(jnp.float32)

    # Branch-independent inputs: zero-pad the sequence to L_max, flatten
    # (batch, time) rows, and precompute the un-masked depth-K*C im2col slab in
    # XLA so the kernel's main operand is already 192 lanes wide.
    xflat = jnp.pad(h, ((0, 0), (0, L_max - total), (0, 0))).reshape(R, C)
    xe = jnp.pad(xflat, ((left, K - 1 - left), (0, 0)))
    xslab = jnp.concatenate([xe[j:j + R] for j in range(K)], axis=1)  # (R, K*C)

    kern = functools.partial(_timesblock_kernel, K=K, left=left, R=R)
    grid_spec = pltpu.PrefetchScalarGridSpec(
        num_scalar_prefetch=1,
        grid=(kk,),
        in_specs=[
            pl.BlockSpec((R, K * C), lambda i, s: (0, 0)),               # xslab
            pl.BlockSpec((None, R, K * C), lambda i, s: (s[i], 0, 0)),   # mask1
            pl.BlockSpec((None, R, K * F), lambda i, s: (s[i], 0, 0)),   # mask2
            pl.BlockSpec((K * C, F), lambda i, s: (0, 0)),               # w1 (bf16)
            pl.BlockSpec((1, F), lambda i, s: (0, 0)),                   # b1
            pl.BlockSpec((K * F, C), lambda i, s: (0, 0)),               # w2 (bf16)
            pl.BlockSpec((1, C), lambda i, s: (0, 0)),                   # b2
            pl.BlockSpec((None, R, C), lambda i, s: (i, 0, 0)),          # branch wt
        ],
        out_specs=pl.BlockSpec((R, C), lambda i, s: (0, 0)),
        scratch_shapes=[pltpu.VMEM((R + K - 1, F), jnp.float32)],
    )
    y = pl.pallas_call(
        kern,
        out_shape=jax.ShapeDtypeStruct((R, C), jnp.float32),
        grid_spec=grid_spec,
        compiler_params=pltpu.CompilerParams(
            dimension_semantics=("arbitrary",)),      # reduction over branches
    )(sel, xslab, pc["mask1"], pc["mask2"],
      lp["conv1_w"].astype(jnp.bfloat16), lp["conv1_b"].reshape(1, F),
      lp["conv2_w"].astype(jnp.bfloat16), lp["conv2_b"].reshape(1, C),
      wrow)

    return y.reshape(B, L_max, C)[:, :total, :] + h   # crop + residual (tiny, XLA)


def timesnet_forward(x, params, cfg, pc):
    B, T, _ = x.shape
    # Embedding / classifier: pallas_call launch cost exceeds the compute at
    # these shapes (Din=4 / Dout=3), so they stay as plain XLA matmuls.
    h = jnp.dot(x, params["emb_w"]) + params["emb_b"]
    for lp in params["layers"]:
        h = times_block(h, lp, pc, cfg)
    flat = h.reshape(B, T * cfg["d_model"])                     # nn.Flatten
    return jnp.dot(flat, params["fc_w"]) + params["fc_b"]       # (B, num_classes)


# ----------------------------------------------------------------------------
# Pure-jnp reference (mirrors the PyTorch forward; used only for a self-check)
# ----------------------------------------------------------------------------
def _ref_conv_same(x, w, b, K):
    M, W, C = x.shape
    left = (K - 1) // 2
    xp = jnp.pad(x, ((0, 0), (left, K - 1 - left), (0, 0)))
    acc = jnp.zeros((M, W, w.shape[1]), jnp.float32)
    for j in range(K):
        acc = acc + jnp.einsum("mwc,cf->mwf", xp[:, j:j + W, :],
                               w[j * C:(j + 1) * C])
    return acc + b


def _ref_forward(x, params, cfg):
    B, T, _ = x.shape
    total = cfg["seq_len"] + cfg["pred_len"]
    K = cfg["num_kernels"]
    h = jnp.dot(x, params["emb_w"]) + params["emb_b"]
    for lp in params["layers"]:
        top_idx, pw = fft_topk(h, cfg["top_k"])
        tops = np.asarray(jax.device_get(top_idx))
        periods = [int(total // f) for f in tops]
        pw = jax.nn.softmax(pw, axis=1)
        res = []
        for p in periods:
            Hh = -(-total // p)
            length = Hh * p
            xb = h if length == total else jnp.concatenate(
                [h, jnp.zeros((B, length - total, h.shape[2]), h.dtype)], axis=1)
            xb = xb.reshape(B * Hh, p, h.shape[2])
            y = jnp.maximum(
                _ref_conv_same(xb, lp["conv1_w"], lp["conv1_b"], K), 0.0)
            y = _ref_conv_same(y, lp["conv2_w"], lp["conv2_b"], K)
            res.append(y.reshape(B, length, -1)[:, :total, :])
        res = jnp.stack(res, axis=0)                            # (k, B, T, N)
        h = jnp.einsum("bk,kbtn->btn", pw, res) + h
    return jnp.dot(h.reshape(B, T * cfg["d_model"]),
                   params["fc_w"]) + params["fc_b"]


# ----------------------------------------------------------------------------
# Deterministic parameter init (same shapes as the nn.Module's __init__)
# ----------------------------------------------------------------------------
def init_params(cfg, seed=42):
    key = jax.random.PRNGKey(seed)

    def nxt():
        nonlocal key
        key, sub = jax.random.split(key)
        return sub

    d_model, d_ff, K = cfg["d_model"], cfg["d_ff"], cfg["num_kernels"]
    params = {
        "emb_w": 0.1 * jax.random.normal(
            nxt(), (cfg["num_features"], d_model), jnp.float32),
        "emb_b": 0.01 * jax.random.normal(nxt(), (d_model,), jnp.float32),
        "fc_w": 0.1 * jax.random.normal(
            nxt(), (cfg["seq_len"] * d_model, cfg["num_classes"]), jnp.float32),
        "fc_b": 0.01 * jax.random.normal(
            nxt(), (cfg["num_classes"],), jnp.float32),
        "layers": [],
    }
    for _ in range(cfg["e_layers"]):
        params["layers"].append({
            # conv weights stored im2col-ordered (K*Cin, Cout);
            # row j*Cin + c corresponds to torch weight[cout, c, 0, j].
            "conv1_w": 0.1 * jax.random.normal(
                nxt(), (K * d_model, d_ff), jnp.float32),
            "conv1_b": 0.01 * jax.random.normal(nxt(), (d_ff,), jnp.float32),
            "conv2_w": 0.1 * jax.random.normal(
                nxt(), (K * d_ff, d_model), jnp.float32),
            "conv2_b": 0.01 * jax.random.normal(nxt(), (d_model,), jnp.float32),
        })
    return params


# ----------------------------------------------------------------------------
if __name__ == "__main__":
    cfg = CFG
    params = init_params(cfg)

    key = jax.random.PRNGKey(0)
    B = 2
    x = jax.random.normal(
        key, (B, cfg["seq_len"], cfg["num_features"]), jnp.float32)

    pc = build_period_consts(cfg, B)
    fwd = jax.jit(lambda xx, pp: timesnet_forward(xx, pp, cfg, pc))
    out = jax.block_until_ready(fwd(x, params))

    assert out.shape == (B, cfg["num_classes"]), out.shape
    assert bool(jnp.all(jnp.isfinite(out)))

    # Correctness self-check against a pure-jnp mirror of the PyTorch forward.
    # Tolerance accounts for bf16 MXU operands (f32 accumulation) in the kernel.
    ref = jax.block_until_ready(_ref_forward(x, params, cfg))
    err = float(jnp.max(jnp.abs(out - ref)))
    assert np.allclose(np.asarray(out), np.asarray(ref),
                       rtol=3e-2, atol=3e-2), f"max abs err {err}"

    print("KERNEL_OK")
</pallas_src>

<mosaic_0001>
module attributes {stable_mosaic.version = 11 : i64} {
  func.func @_timesblock_kernel(%arg0: i32, %arg1: memref<2xi32, #tpu.memory_space<smem>>, %arg2: memref<40x192xf32, #tpu.memory_space<vmem>>, %arg3: memref<1x40x192xf32, #tpu.memory_space<vmem>>, %arg4: memref<1x40x192xf32, #tpu.memory_space<vmem>>, %arg5: memref<192x32xbf16, #tpu.memory_space<vmem>>, %arg6: memref<1x32xf32, #tpu.memory_space<vmem>>, %arg7: memref<192x32xbf16, #tpu.memory_space<vmem>>, %arg8: memref<1x32xf32, #tpu.memory_space<vmem>>, %arg9: memref<1x40x32xf32, #tpu.memory_space<vmem>>, %arg10: memref<40x32xf32, #tpu.memory_space<vmem>>, %arg11: memref<45x32xf32, #tpu.memory_space<vmem>>) attributes {dimension_semantics = [#tpu.dimension_semantics<arbitrary>], iteration_bounds = array<i64: 2>, scalar_prefetch = 1 : i64, scratch_operands = 1 : i64, tpu.core_type = #tpu.core_type<tc>, window_params = [{pipeline_mode = #tpu.pipeline_mode<synchronous>, transform_indices = @transform_0, window_bounds = array<i64: 40, 192>}, {transform_indices = @transform_1, window_bounds = array<i64: 1, 40, 192>}, {transform_indices = @transform_2, window_bounds = array<i64: 1, 40, 192>}, {pipeline_mode = #tpu.pipeline_mode<synchronous>, transform_indices = @transform_3, window_bounds = array<i64: 192, 32>}, {pipeline_mode = #tpu.pipeline_mode<synchronous>, transform_indices = @transform_4, window_bounds = array<i64: 1, 32>}, {pipeline_mode = #tpu.pipeline_mode<synchronous>, transform_indices = @transform_5, window_bounds = array<i64: 192, 32>}, {pipeline_mode = #tpu.pipeline_mode<synchronous>, transform_indices = @transform_6, window_bounds = array<i64: 1, 32>}, {transform_indices = @transform_7, window_bounds = array<i64: 1, 40, 32>}, {pipeline_mode = #tpu.pipeline_mode<synchronous>, transform_indices = @transform_8, window_bounds = array<i64: 40, 32>}]} {
    %c0_i32 = arith.constant 0 : i32
    %0 = arith.cmpi eq, %arg0, %c0_i32 : i32
    %1 = arith.extui %0 : i1 to i32
    %c0_i32_0 = arith.constant 0 : i32
    %2 = arith.cmpi ne, %1, %c0_i32_0 : i32
    scf.if %2 {
      %cst_34 = arith.constant 0.000000e+00 : f32
      %38 = vector.broadcast %cst_34 : f32 to vector<40x32xf32>
      %c0_35 = arith.constant 0 : index
      %c0_36 = arith.constant 0 : index
      %39 = vector.load %arg10[%c0_35, %c0_36] : memref<40x32xf32, #tpu.memory_space<vmem>>, vector<40x32xf32>
      tpu.vector_store %arg10[%c0_35, %c0_36], %38 {strides = array<i32>} : memref<40x32xf32, #tpu.memory_space<vmem>>, vector<40x32xf32>,
      %cst_37 = arith.constant 0.000000e+00 : f32
      %40 = vector.broadcast %cst_37 : f32 to vector<45x32xf32>
      %c0_38 = arith.constant 0 : index
      %c0_39 = arith.constant 0 : index
      %41 = vector.load %arg11[%c0_38, %c0_39] : memref<45x32xf32, #tpu.memory_space<vmem>>, vector<45x32xf32>
      tpu.vector_store %arg11[%c0_38, %c0_39], %40 {strides = array<i32>} : memref<45x32xf32, #tpu.memory_space<vmem>>, vector<45x32xf32>,
    } else {
    }
    %c0 = arith.constant 0 : index
    %c0_1 = arith.constant 0 : index
    %3 = vector.load %arg2[%c0, %c0_1] : memref<40x192xf32, #tpu.memory_space<vmem>>, vector<40x192xf32>
    %c0_2 = arith.constant 0 : index
    %c0_3 = arith.constant 0 : index
    %c0_4 = arith.constant 0 : index
    %4 = vector.load %arg3[%c0_2, %c0_3, %c0_4] : memref<1x40x192xf32, #tpu.memory_space<vmem>>, vector<1x40x192xf32>
    %5 = vector.shape_cast %4 : vector<1x40x192xf32> to vector<40x192xf32>
    %6 = arith.mulf %3, %5 : vector<40x192xf32>
    %7 = arith.truncf %6 : vector<40x192xf32> to vector<40x192xbf16>
    %c0_5 = arith.constant 0 : index
    %c0_6 = arith.constant 0 : index
    %8 = vector.load %arg5[%c0_5, %c0_6] : memref<192x32xbf16, #tpu.memory_space<vmem>>, vector<192x32xbf16>
    %cst = arith.constant dense<0.000000e+00> : vector<40x32xf32>
    %9 = tpu.matmul %7, %8, %cst {dimension_numbers = #tpu.dot_dimension_numbers<[1], [0], [0], [1], [0, 0, 1, 1], [], []>} : vector<40x192xbf16>, vector<192x32xbf16>, vector<40x32xf32> -> vector<40x32xf32>
    %c0_7 = arith.constant 0 : index
    %c0_8 = arith.constant 0 : index
    %10 = vector.load %arg6[%c0_7, %c0_8] : memref<1x32xf32, #tpu.memory_space<vmem>>, vector<1x32xf32>
    %11 = vector.broadcast %10 : vector<1x32xf32> to vector<40x32xf32>
    %12 = arith.addf %9, %11 : vector<40x32xf32>
    %cst_9 = arith.constant 0.000000e+00 : f32
    %13 = vector.broadcast %cst_9 : f32 to vector<40x32xf32>
    %14 = arith.maximumf %12, %13 : vector<40x32xf32>
    %c2 = arith.constant 2 : index
    %c0_10 = arith.constant 0 : index
    %15 = vector.load %arg11[%c2, %c0_10] : memref<45x32xf32, #tpu.memory_space<vmem>>, vector<40x32xf32>
    tpu.vector_store %arg11[%c2, %c0_10], %14 {strides = array<i32>} : memref<45x32xf32, #tpu.memory_space<vmem>>, vector<40x32xf32>,
    %c0_11 = arith.constant 0 : index
    %c0_12 = arith.constant 0 : index
    %16 = vector.load %arg11[%c0_11, %c0_12] : memref<45x32xf32, #tpu.memory_space<vmem>>, vector<40x32xf32>
    %c1 = arith.constant 1 : index
    %c0_13 = arith.constant 0 : index
    %17 = vector.load %arg11[%c1, %c0_13] : memref<45x32xf32, #tpu.memory_space<vmem>>, vector<40x32xf32>
    %c2_14 = arith.constant 2 : index
    %c0_15 = arith.constant 0 : index
    %18 = vector.load %arg11[%c2_14, %c0_15] : memref<45x32xf32, #tpu.memory_space<vmem>>, vector<40x32xf32>
    %c3 = arith.constant 3 : index
    %c0_16 = arith.constant 0 : index
    %19 = vector.load %arg11[%c3, %c0_16] : memref<45x32xf32, #tpu.memory_space<vmem>>, vector<40x32xf32>
    %c4 = arith.constant 4 : index
    %c0_17 = arith.constant 0 : index
    %20 = vector.load %arg11[%c4, %c0_17] : memref<45x32xf32, #tpu.memory_space<vmem>>, vector<40x32xf32>
    %c5 = arith.constant 5 : index
    %c0_18 = arith.constant 0 : index
    %21 = vector.load %arg11[%c5, %c0_18] : memref<45x32xf32, #tpu.memory_space<vmem>>, vector<40x32xf32>
    %22 = tpu.concatenate %16, %17, %18, %19, %20, %21 in 1 : vector<40x32xf32>, vector<40x32xf32>, vector<40x32xf32>, vector<40x32xf32>, vector<40x32xf32>, vector<40x32xf32> -> vector<40x192xf32>
    %c0_19 = arith.constant 0 : index
    %c0_20 = arith.constant 0 : index
    %c0_21 = arith.constant 0 : index
    %23 = vector.load %arg4[%c0_19, %c0_20, %c0_21] : memref<1x40x192xf32, #tpu.memory_space<vmem>>, vector<1x40x192xf32>
    %24 = vector.shape_cast %23 : vector<1x40x192xf32> to vector<40x192xf32>
    %25 = arith.mulf %22, %24 : vector<40x192xf32>
    %26 = arith.truncf %25 : vector<40x192xf32> to vector<40x192xbf16>
    %c0_22 = arith.constant 0 : index
    %c0_23 = arith.constant 0 : index
    %27 = vector.load %arg7[%c0_22, %c0_23] : memref<192x32xbf16, #tpu.memory_space<vmem>>, vector<192x32xbf16>
    %cst_24 = arith.constant dense<0.000000e+00> : vector<40x32xf32>
    %28 = tpu.matmul %26, %27, %cst_24 {dimension_numbers = #tpu.dot_dimension_numbers<[1], [0], [0], [1], [0, 0, 1, 1], [], []>} : vector<40x192xbf16>, vector<192x32xbf16>, vector<40x32xf32> -> vector<40x32xf32>
    %c0_25 = arith.constant 0 : index
    %c0_26 = arith.constant 0 : index
    %29 = vector.load %arg8[%c0_25, %c0_26] : memref<1x32xf32, #tpu.memory_space<vmem>>, vector<1x32xf32>
    %30 = vector.broadcast %29 : vector<1x32xf32> to vector<40x32xf32>
    %31 = arith.addf %28, %30 : vector<40x32xf32>
    %c0_27 = arith.constant 0 : index
    %c0_28 = arith.constant 0 : index
    %32 = vector.load %arg10[%c0_27, %c0_28] : memref<40x32xf32, #tpu.memory_space<vmem>>, vector<40x32xf32>
    %c0_29 = arith.constant 0 : index
    %c0_30 = arith.constant 0 : index
    %c0_31 = arith.constant 0 : index
    %33 = vector.load %arg9[%c0_29, %c0_30, %c0_31] : memref<1x40x32xf32, #tpu.memory_space<vmem>>, vector<1x40x32xf32>
    %34 = vector.shape_cast %33 : vector<1x40x32xf32> to vector<40x32xf32>
    %35 = arith.mulf %34, %31 : vector<40x32xf32>
    %36 = arith.addf %32, %35 : vector<40x32xf32>
    %c0_32 = arith.constant 0 : index
    %c0_33 = arith.constant 0 : index
    %37 = vector.load %arg10[%c0_32, %c0_33] : memref<40x32xf32, #tpu.memory_space<vmem>>, vector<40x32xf32>
    tpu.vector_store %arg10[%c0_32, %c0_33], %36 {strides = array<i32>} : memref<40x32xf32, #tpu.memory_space<vmem>>, vector<40x32xf32>,
    return
  }
  func.func @transform_0(%arg0: i32, %arg1: memref<2xi32, #tpu.memory_space<smem>>) -> (i32, i32) {
    %c0_i32 = arith.constant 0 : i32
    %c0_i32_0 = arith.constant 0 : i32
    %c0_i32_1 = arith.constant 0 : i32
    return %c0_i32, %c0_i32_0 : i32, i32
  }
  func.func @transform_1(%arg0: i32, %arg1: memref<2xi32, #tpu.memory_space<smem>>) -> (i32, i32, i32) {
    %0 = arith.index_cast %arg0 : i32 to index
    %1 = memref.load %arg1[%0] : memref<2xi32, #tpu.memory_space<smem>>
    %c0_i32 = arith.constant 0 : i32
    %c0_i32_0 = arith.constant 0 : i32
    %c0_i32_1 = arith.constant 0 : i32
    return %1, %c0_i32, %c0_i32_0 : i32, i32, i32
  }
  func.func @transform_2(%arg0: i32, %arg1: memref<2xi32, #tpu.memory_space<smem>>) -> (i32, i32, i32) {
    %0 = arith.index_cast %arg0 : i32 to index
    %1 = memref.load %arg1[%0] : memref<2xi32, #tpu.memory_space<smem>>
    %c0_i32 = arith.constant 0 : i32
    %c0_i32_0 = arith.constant 0 : i32
    %c0_i32_1 = arith.constant 0 : i32
    return %1, %c0_i32, %c0_i32_0 : i32, i32, i32
  }
  func.func @transform_3(%arg0: i32, %arg1: memref<2xi32, #tpu.memory_space<smem>>) -> (i32, i32) {
    %c0_i32 = arith.constant 0 : i32
    %c0_i32_0 = arith.constant 0 : i32
    %c0_i32_1 = arith.constant 0 : i32
    return %c0_i32, %c0_i32_0 : i32, i32
  }
  func.func @transform_4(%arg0: i32, %arg1: memref<2xi32, #tpu.memory_space<smem>>) -> (i32, i32) {
    %c0_i32 = arith.constant 0 : i32
    %c0_i32_0 = arith.constant 0 : i32
    %c0_i32_1 = arith.constant 0 : i32
    return %c0_i32, %c0_i32_0 : i32, i32
  }
  func.func @transform_5(%arg0: i32, %arg1: memref<2xi32, #tpu.memory_space<smem>>) -> (i32, i32) {
    %c0_i32 = arith.constant 0 : i32
    %c0_i32_0 = arith.constant 0 : i32
    %c0_i32_1 = arith.constant 0 : i32
    return %c0_i32, %c0_i32_0 : i32, i32
  }
  func.func @transform_6(%arg0: i32, %arg1: memref<2xi32, #tpu.memory_space<smem>>) -> (i32, i32) {
    %c0_i32 = arith.constant 0 : i32
    %c0_i32_0 = arith.constant 0 : i32
    %c0_i32_1 = arith.constant 0 : i32
    return %c0_i32, %c0_i32_0 : i32, i32
  }
  func.func @transform_7(%arg0: i32, %arg1: memref<2xi32, #tpu.memory_space<smem>>) -> (i32, i32, i32) {
    %c0_i32 = arith.constant 0 : i32
    %c0_i32_0 = arith.constant 0 : i32
    %c0_i32_1 = arith.constant 0 : i32
    return %arg0, %c0_i32, %c0_i32_0 : i32, i32, i32
  }
  func.func @transform_8(%arg0: i32, %arg1: memref<2xi32, #tpu.memory_space<smem>>) -> (i32, i32) {
    %c0_i32 = arith.constant 0 : i32
    %c0_i32_0 = arith.constant 0 : i32
    %c0_i32_1 = arith.constant 0 : i32
    return %c0_i32, %c0_i32_0 : i32, i32
  }
}

</mosaic_0001>

<bundles_post_ra>
// kernel: _lambda_.2
= control target key start
LH: loop header
LB: loop body
LE: loop exit
PB: predicated region body
PF: predicated region fallthrough
CT: control target
= control target key end

     0   :  { %s1431_s0 = inlined_call_operand.vmem [shape: s32[2], index: 0, kind: input, shape index: {}]   ;;  %s1432_s1 = inlined_call_operand.vmem [shape: f32[40,192], index: 1, kind: input, shape index: {}]   ;;  %s1433_s2 = inlined_call_operand.vmem [shape: f32[6,40,192], index: 2, kind: input, shape index: {}, may-alias: {2,3}]   ;;  %s1434_s3 = inlined_call_operand.vmem [shape: f32[6,40,192], index: 3, kind: input, shape index: {}, may-alias: {2,3}]   ;;  %s1435_s4 = inlined_call_operand.vmem [shape: bf16[192,32], index: 4, kind: input, shape index: {}]   ;;  %s1436_s5 = inlined_call_operand.vmem [shape: f32[1,32], index: 5, kind: input, shape index: {}]   ;;  %s1437_s6 = inlined_call_operand.vmem [shape: bf16[192,32], index: 6, kind: input, shape index: {}]   ;;  %s1438_s7 = inlined_call_operand.vmem [shape: f32[1,32], index: 7, kind: input, shape index: {}]   ;;  %s1439_s8 = inlined_call_operand.vmem [shape: f32[2,40,32], index: 8, kind: input, shape index: {}]   ;;  %s1440_s9 = inlined_call_operand.vmem [shape: f32[40,32], index: 9, kind: output, shape index: {}]  }
   0x1   :  { %s14_s11 = sshll.u32 %s1431_s0, 4  ;;  %s15_s11 = int_to_ptr.vmem [resolvable:$true] %s14_s11 }
   0x2   :  { %s1071_s12 = scalar_lea.vmem %s15_s11, 16  ;;  %p1076_p1 = scmp.lt.s32.totalorder %s15_s11, %s15_s11 }
   0x3   :  { %p1072_p0 = scmp.ne.s32.totalorder %s15_s11, %s1071_s12  ;;  %p1077_p2 = scmp.lt.s32.totalorder %s1071_s12, %s1071_s12 }
   0x5   :  { %p1078_p3 = por %p1077_p2, %p1076_p1 }
   0x7   :  { %p1079_p4 = pnand %p1078_p3, %p1072_p0 }
   0x9   :  { %1082 = shalt.err (!%p1079_p4)  }
   0xa   :  { %s1093_s13 = smov [#allocation4]  }
   0xb   :  { %17 = dma.vmem_to_smem %s15_s11, 16, %s1093_s13, [#allocation3] }
   0xc   :  { %1087 = dma.done.wait [#allocation3], 16 }
   0xd   :  { %1088 = vsyncadd [#allocation3], 4294967280 }
   0xe   :  { %19 = sfence }
   0xf   :  { %s1152_s14 = smov 0  }
  0x10 LB: > { %s988_s0 = sadd.s32 4294967295, %s1091_s14   ;;  %p991_p5 = scmp.ge.s32.totalorder %s1091_s14, 1  ;;  %s1091_s14 = sphi %s1152_s14, %s25_s14  }
  0x11   : > { %p292_p6 = scmp.lt.s32.totalorder %s1091_s14, 3 }
  0x13   : > { %p293_p7 = pnand %p991_p5, %p292_p6 }
  0x14   : > { %s333_s15 = sld [smem:[#allocation4 + %s988_s0]] (!%p293_p7)  ;;  %p347_p8 = scmp.lt.s32.totalorder (!%p293_p7), %s988_s0, 1 }
  0x15   : > { %296 = sbr.rel (%p293_p7) target bundleno = 690 (0x2b2), region = 52  ;;  %s340_s16 = sld [smem:[#allocation4 + %s988_s0]] (!%p293_p7) }
  0x16   : > { %p995_p11 = scmp.ne.s32.totalorder (!%p293_p7), %s988_s0, 0 }
  0x1a   : > { %p334_p9 = scmp.lt.s32.totalorder (!%p293_p7), %s333_s15, 5 }
  0x1b   : > { %p341_p10 = scmp.lt.s32.totalorder (!%p293_p7), %s340_s16, 5 }
  0x1c   : > { %s348_s17 = scalar_select %p347_p8, %s988_s0, 1 }
  0x1d   : > { %s1442_s15 = smov (!%p334_p9, %s333_s15), 5  ;;  %s1444_s16 = smov (!%p341_p10, %s340_s16), 5 }
  0x1e   : > { %s1032_s18 = smul.u32 40, %s348_s17  ;;  %vm357_vm0 = vcmask (!%p995_p11), 261120   ;;  %vm368_vm1 = vcmask (!%p995_p11), 258048   ;;  %v1094_v0 = vmov (!%p995_p11), 0.0  }
  0x1f   : > { %s1030_s22 = smul.u32 80, %s1442_s15  ;;  %358 = vst.msk [vmem:[%s1440_s9] sm:$0xff] (!%p995_p11), %vm357_vm0, %v1094_v0  ;;  %359 = vst.msk [vmem:[%s1440_s9 + $0x8] sm:$0xff] (!%p995_p11), %vm357_vm0, %v1094_v0 }
  0x20   : > { %s1163_s21 = scalar_lea.vmem %s1439_s8, %s1032_s18  ;;  %s1031_s23 = smul.u32 80, %s1444_s16  ;;  %360 = vst.msk [vmem:[%s1440_s9 + $0x10] sm:$0xff] (!%p995_p11), %vm357_vm0, %v1094_v0  ;;  %361 = vst.msk [vmem:[%s1440_s9 + $0x18] sm:$0xff] (!%p995_p11), %vm357_vm0, %v1094_v0 }
  0x21   : > { %s1168_s26 = scalar_lea.vmem %s1433_s2, %s1030_s22  ;;  %356 = sbr.rel (%p995_p11) target bundleno = 40 (0x28), region = 56  ;;  %362 = vst.msk [vmem:[%s1440_s9 + $0x20] sm:$0xff] (!%p995_p11), %vm357_vm0, %v1094_v0  ;;  %363 = vst.msk [vmem:[#allocation2] sm:$0xff] (!%p995_p11), %vm357_vm0, %v1094_v0 }
  0x22   : > { %s1173_s29 = scalar_lea.vmem %s1434_s3, %s1031_s23  ;;  %364 = vst.msk [vmem:[#allocation2 + $0x8] sm:$0xff] (!%p995_p11), %vm357_vm0, %v1094_v0  ;;  %365 = vst.msk [vmem:[#allocation2 + $0x10] sm:$0xff] (!%p995_p11), %vm357_vm0, %v1094_v0 }
  0x23   : > { %366 = vst.msk [vmem:[#allocation2 + $0x18] sm:$0xff] (!%p995_p11), %vm357_vm0, %v1094_v0  ;;  %367 = vst.msk [vmem:[#allocation2 + $0x20] sm:$0xff] (!%p995_p11), %vm357_vm0, %v1094_v0 }
  0x24   : > { %369 = vst.msk [vmem:[#allocation2 + $0x28] sm:$0x1f] (!%p995_p11), %vm368_vm1, %v1094_v0 }
  0x28 PF: > { %v1047_v1 = vld [vmem:[%s1435_s4] sm:$0xff]   ;;  %v1095_v2 = vmov 0   ;;  %v1048_v3 = vld [vmem:[%s1435_s4 + $0x8] sm:$0xff]   ;;  %v1049_v4 = vld [vmem:[%s1435_s4 + $0x10] sm:$0xff]   ;;  %vm509_vm2 = vcmask 523264   ;;  %vm580_vm3 = vcmask 261120  }
  0x29   : > { %519 = vmatprep.subr.bf16.mxu0 %v1095_v2  ;;  %855 = vmatprep.subr.bf16.mxu1 %v1095_v2  ;;  %v1050_v5 = vld [vmem:[%s1435_s4 + $0x18] sm:$0xff]   ;;  %v371_v6 = vld [vmem:[%s1432_s1 + $0x8] sm:$0xff]  ;;  %v1051_v11 = vld [vmem:[%s1435_s4 + $0x20] sm:$0xff]   ;;  %s1097_s15 = smov 32   ;;  %s1098_s0 = smov 96   ;;  %vm706_vm4 = vcmask 785408  }
  0x2a   : > { %520 = vmatpush1.bf16.msra.mxu0 %v1047_v1  ;;  %v373_v7 = vld [vmem:[%s1432_s1 + $0x18] sm:$0xff]  ;;  %v381_v8 = vld [vmem:[%s1168_s26 + $0x8] sm:$0xff]  ;;  %v1053_v15 = vld [vmem:[%s1435_s4 + $0x30] sm:$0xff]  }
  0x2b   : > { %521 = vmatprep.subr.bf16.mxu0 %v1095_v2  ;;  %v383_v9 = vld [vmem:[%s1168_s26 + $0x18] sm:$0xff]  ;;  %v391_v10 = vmul.f32 %v381_v8, %v371_v6  ;;  %v1052_v14 = vld [vmem:[%s1435_s4 + $0x28] sm:$0xff]   ;;  %v1055_v17 = vld [vmem:[%s1435_s4 + $0x40] sm:$0xff]  }
  0x2c   : > { %v393_v12 = vmul.f32 %v383_v9, %v373_v7  ;;  %v1054_v16 = vld [vmem:[%s1435_s4 + $0x38] sm:$0xff]   ;;  %v1056_v18 = vld [vmem:[%s1435_s4 + $0x48] sm:$0xff]   ;;  %v1057_v19 = vld [vmem:[%s1435_s4 + $0x50] sm:$0xff]  }
  0x2d   : > { %v370_v20 = vld [vmem:[%s1432_s1] sm:$0xff]  ;;  %v372_v21 = vld [vmem:[%s1432_s1 + $0x10] sm:$0xff]  ;;  %v375_v24 = vld [vmem:[%s1432_s1 + $0x28] sm:$0xff] }
  0x2e   : > { %522 = vmatpush1.bf16.msra.mxu0 %v1048_v3  ;;  %v401_v13 = vpack.c.bf16 %v393_v12, %v391_v10  ;;  %v380_v22 = vld [vmem:[%s1168_s26] sm:$0xff]  ;;  %v382_v23 = vld [vmem:[%s1168_s26 + $0x10] sm:$0xff]  ;;  %v377_v25 = vld [vmem:[%s1432_s1 + $0x38] sm:$0xff] }
  0x2f   : > { %523 = vmatprep.subr.bf16.mxu0 %v1095_v2  ;;  %v385_v26 = vld [vmem:[%s1168_s26 + $0x28] sm:$0xff]  ;;  %v387_v27 = vld [vmem:[%s1168_s26 + $0x38] sm:$0xff]  ;;  %v390_v28 = vmul.f32 %v380_v22, %v370_v20  ;;  %v392_v29 = vmul.f32 %v382_v23, %v372_v21  ;;  %v374_v34 = vld [vmem:[%s1432_s1 + $0x20] sm:$0xff] }
  0x30   : > { %1009 = vmatprep.mubr.msk.bf16.mxu0 %vm509_vm2, %v401_v13  ;;  %v1058_v30 = vld [vmem:[%s1435_s4 + $0x58] sm:$0xff]   ;;  %v395_v31 = vmul.f32 %v385_v26, %v375_v24  ;;  %v397_v32 = vmul.f32 %v387_v27, %v377_v25  ;;  %v376_v36 = vld [vmem:[%s1432_s1 + $0x30] sm:$0xff]  ;;  %v384_v37 = vld [vmem:[%s1168_s26 + $0x20] sm:$0xff] }
  0x31   : > { %v400_v33 = vpack.c.bf16 %v392_v29, %v390_v28  ;;  %v386_v38 = vld [vmem:[%s1168_s26 + $0x30] sm:$0xff]  ;;  %v379_v39 = vld [vmem:[%s1432_s1 + $0x48] sm:$0xff]  ;;  %v394_v41 = vmul.f32 %v384_v37, %v374_v34  ;;  %v378_v46 = vld [vmem:[%s1432_s1 + $0x40] sm:$0xff] }
  0x32   : > { %524 = vmatpush1.bf16.msra.mxu0 %v1049_v4  ;;  %v403_v35 = vpack.c.bf16 %v397_v32, %v395_v31  ;;  %v389_v40 = vld [vmem:[%s1168_s26 + $0x48] sm:$0xff]  ;;  %v396_v42 = vmul.f32 %v386_v38, %v376_v36  ;;  %v388_v47 = vld [vmem:[%s1168_s26 + $0x40] sm:$0xff]  ;;  %v1061_v52 = vld [vmem:[%s1437_s6 + $0x10] sm:$0xff]   ;;  %s1096_s26 = smov 64  }
  0x33   : > { %525 = vmatprep.subr.bf16.mxu0 %v1095_v2  ;;  %v399_v43 = vmul.f32 %v389_v40, %v379_v39  ;;  %v398_v48 = vmul.f32 %v388_v47, %v378_v46  ;;  %v1059_v50 = vld [vmem:[%s1437_s6] sm:$0xff]   ;;  %v1060_v51 = vld [vmem:[%s1437_s6 + $0x8] sm:$0xff]   ;;  %v1062_v53 = vld [vmem:[%s1437_s6 + $0x18] sm:$0xff]  }
  0x34   : > { %v402_v44 = vpack.c.bf16 %v396_v42, %v394_v41  ;;  %856 = vmatpush1.bf16.msra.mxu1 %v1059_v50  ;;  %v1063_v54 = vld [vmem:[%s1437_s6 + $0x20] sm:$0xff]   ;;  %v1064_v55 = vld [vmem:[%s1437_s6 + $0x28] sm:$0xff]   ;;  %v1065_v56 = vld [vmem:[%s1437_s6 + $0x30] sm:$0xff]  }
  0x35   : > { %v405_v45 = vpack.c.bf16 %v399_v43, %v399_v43  ;;  %v404_v49 = vpack.c.bf16 %v398_v48, %v398_v48  ;;  %857 = vmatprep.subr.bf16.mxu1 %v1095_v2  ;;  %v1066_v57 = vld [vmem:[%s1437_s6 + $0x38] sm:$0xff]   ;;  %v996_v58 = vld [vmem:[%s1436_s5] ss:$0 sm:$0xff]  ;;  %v1068_v4 = vld [vmem:[%s1437_s6 + $0x48] sm:$0xff]  }
  0x36   : > { %526 = vmatpush1.bf16.msra.mxu0 %v1050_v5  ;;  %v1067_v60 = vld [vmem:[%s1437_s6 + $0x40] sm:$0xff]   ;;  %v1069_v9 = vld [vmem:[%s1437_s6 + $0x50] sm:$0xff]   ;;  %v720_v46 = vld [vmem:[%s1173_s29 + $0x18] sm:$0xff] }
  0x37   : > { %527 = vmatprep.subr.bf16.mxu0 %v1095_v2  ;;  %v718_v47 = vld [vmem:[%s1173_s29 + $0x8] sm:$0xff] }
  0x38   : > { %858 = vmatpush1.bf16.msra.mxu1 %v1060_v51 }
  0x39   : > { %859 = vmatprep.subr.bf16.mxu1 %v1095_v2 }
  0x3a   : > { %528 = vmatpush1.bf16.msra.mxu0 %v1051_v11 }
  0x3b   : > { %529 = vmatprep.subr.bf16.mxu0 %v1095_v2 }
  0x3c   : > { %860 = vmatpush1.bf16.msra.mxu1 %v1061_v52 }
  0x3d   : > { %861 = vmatprep.subr.bf16.mxu1 %v1095_v2 }
  0x3e   : > { %530 = vmatpush1.bf16.msra.mxu0 %v1052_v14 }
  0x3f   : > { %531 = vmatprep.subr.bf16.mxu0 %v1095_v2 }
  0x40   : > { %862 = vmatpush1.bf16.msra.mxu1 %v1062_v53 }
  0x41   : > { %863 = vmatprep.subr.bf16.mxu1 %v1095_v2 }
  0x42   : > { %532 = vmatpush1.bf16.msra.mxu0 %v1053_v15 }
  0x43   : > { %533 = vmatprep.subr.bf16.mxu0 %v1095_v2 }
  0x44   : > { %864 = vmatpush1.bf16.msra.mxu1 %v1063_v54 }
  0x45   : > { %865 = vmatprep.subr.bf16.mxu1 %v1095_v2 }
  0x46   : > { %534 = vmatpush1.bf16.msra.mxu0 %v1054_v16 }
  0x47   : > { %535 = vmatprep.subr.bf16.mxu0 %v1095_v2 }
  0x48   : > { %866 = vmatpush1.bf16.msra.mxu1 %v1064_v55 }
  0x49   : > { %867 = vmatprep.subr.bf16.mxu1 %v1095_v2 }
  0x4a   : > { %536 = vmatpush1.bf16.msra.mxu0 %v1055_v17  ;;  %v1070_v17 = vld [vmem:[%s1437_s6 + $0x58] sm:$0xff]  }
  0x4b   : > { %537 = vmatprep.subr.bf16.mxu0 %v1095_v2 }
  0x4c   : > { %868 = vmatpush1.bf16.msra.mxu1 %v1065_v56 }
  0x4d   : > { %869 = vmatprep.subr.bf16.mxu1 %v1095_v2 }
  0x4e   : > { %538 = vmatpush1.bf16.msra.mxu0 %v1056_v18 }
  0x4f   : > { %539 = vmatprep.subr.bf16.mxu0 %v1095_v2 }
  0x50   : > { %870 = vmatpush1.bf16.msra.mxu1 %v1066_v57 }
  0x51   : > { %871 = vmatprep.subr.bf16.mxu1 %v1095_v2 }
  0x52   : > { %540 = vmatpush1.bf16.msra.mxu0 %v1057_v19 }
  0x53   : > { %541 = vmatprep.subr.bf16.mxu0 %v1095_v2 }
  0x54   : > { %872 = vmatpush1.bf16.msra.mxu1 %v1067_v60  ;;  %v717_v60 = vld [vmem:[%s1173_s29] sm:$0xff] }
  0x55   : > { %873 = vmatprep.subr.bf16.mxu1 %v1095_v2 }
  0x56   : > { %542 = vmatpush1.bf16.msra.mxu0 %v1058_v30 }
  0x58   : > { %874 = vmatpush1.bf16.msra.mxu1 %v1068_v4 }
  0x59   : > { %552 = vmatmul.mubr.bf16.vlgmr.msra.gmra.mrb[0].mxu0 %v400_v33  ;;  %875 = vmatprep.subr.bf16.mxu1 %v1095_v2 }
  0x5a   : > { %1010 = vmatprep.mubr.msk.bf16.mxu0 %vm509_vm2, %v403_v35 }
  0x5c   : > { %876 = vmatpush1.bf16.msra.mxu1 %v1069_v9 }
  0x5d   : > { %877 = vmatprep.subr.bf16.mxu1 %v1095_v2 }
  0x60   : > { %878 = vmatpush1.bf16.msra.mxu1 %v1070_v17 }
  0x61   : > { %560 = vmatmul.mubr.bf16.gmra.mrb[4].mxu0 %v402_v44 }
  0x62   : > { %1011 = vmatprep.mubr.msk.bf16.mxu0 %vm509_vm2, %v405_v45 }
  0x69   : > { %568 = vmatmul.mubr.bf16.gmra.mrb[8].mxu0 %v404_v49 }
 0x12c   : > { %v553_v59 = vpop.f32.mrb[0].mxu0 }
 0x12d   : > { %v554_v61 = vadd.f32 %v996_v58, %v553_v59  ;;  %v555_v62 = vpop.f32.mrb[1].mxu0  ;;  %v719_v59 = vld [vmem:[%s1173_s29 + $0x10] sm:$0xff] }
 0x12e   : > { %v556_v63 = vpop.f32.mrb[2].mxu0 }
 0x12f   : > { %v575_v0 = vmax.f32 %v554_v61, 0.0  ;;  %v557_v1 = vadd.f32 %v996_v58, %v556_v63  ;;  %v558_v3 = vpop.f32.mrb[3].mxu0 }
 0x131   : > { %581 = vst.msk [vmem:[#allocation2 + $0x2] sm:$0xff] %vm580_vm3, %v575_v0  ;;  %v576_v5 = vmax.f32 %v557_v1, 0.0 }
 0x133   : > { %582 = vst.msk [vmem:[#allocation2 + $0xa] sm:$0xff] %vm580_vm3, %v576_v5 }
 0x134   : > { %v561_v6 = vpop.f32.mrb[4].mxu0 }
 0x135   : > { %v562_v7 = vadd.f32 %v996_v58, %v561_v6  ;;  %v563_v8 = vpop.f32.mrb[5].mxu0 }
 0x136   : > { %v564_v10 = vpop.f32.mrb[6].mxu0 }
 0x137   : > { %v577_v11 = vmax.f32 %v562_v7, 0.0  ;;  %v565_v12 = vadd.f32 %v996_v58, %v564_v10  ;;  %v566_v13 = vpop.f32.mrb[7].mxu0 }
 0x138   : > { %v596_v14 = vld [vmem:[#allocation2 + $0x2] sm:$0xff] }
 0x139   : > { %v591_v15 = vld [vmem:[#allocation2 + $0x1] sm:$0xff]  ;;  %583 = vst.msk [vmem:[#allocation2 + $0x12] sm:$0xff] %vm580_vm3, %v577_v11  ;;  %v578_v16 = vmax.f32 %v565_v12, 0.0  ;;  %641 = vrot.lane.b32.xlu1 %v596_v14, %s1096_s26  ;;  %v724_v12 = vld [vmem:[%s1173_s29 + $0x38] sm:$0xff] }
 0x13a   : > { %621 = vrot.lane.b32.xlu0 %v591_v15, %s1097_s15  ;;  %v597_v19 = vld [vmem:[#allocation2 + $0xa] sm:$0xff]  ;;  %v586_v45 = vld [vmem:[#allocation2] sm:$0xff] }
 0x13b   : > { %584 = vst.msk [vmem:[#allocation2 + $0x1a] sm:$0xff] %vm580_vm3, %v578_v16  ;;  %v592_v20 = vld [vmem:[#allocation2 + $0x9] sm:$0xff] }
 0x13c   : > { %v569_v18 = vpop.f32.mrb[8].mxu0  ;;  %v611_v26 = vld [vmem:[#allocation2 + $0x5] sm:$0xff] }
 0x13d   : > { %v570_v2 = vadd.f32 %v996_v58, %v569_v18  ;;  %643 = vrot.lane.b32.xlu1 %v597_v19, %s1096_s26  ;;  %v571_v21 = vpop.f32.mrb[9].mxu0  ;;  %v601_v28 = vld [vmem:[#allocation2 + $0x3] sm:$0xff] }
 0x13e   : > { %623 = vrot.lane.b32.xlu0 %v592_v20, %s1097_s15  ;;  %v572_v22 = vpop.f32.mrb[10].mxu0  ;;  %v587_v48 = vld [vmem:[#allocation2 + $0x8] sm:$0xff] }
 0x13f   : > { %v579_v23 = vmax.f32 %v570_v2, 0.0  ;;  %v573_v24 = vpop.f32.mrb[11].mxu0  ;;  %v606_v51 = vld [vmem:[#allocation2 + $0x4] sm:$0xff] }
 0x140   : > { %v612_v25 = vld [vmem:[#allocation2 + $0xd] sm:$0xff] }
 0x141   : > { %585 = vst.msk [vmem:[#allocation2 + $0x22] sm:$0xff] %vm580_vm3, %v579_v23  ;;  %683 = vrot.lane.b32.xlu1 %v612_v25, %s1097_s15  ;;  %v602_v27 = vld [vmem:[#allocation2 + $0xb] sm:$0xff] }
 0x142   : > { %681 = vrot.lane.b32.xlu0 %v611_v26, %s1097_s15  ;;  %v594_v29 = vld [vmem:[#allocation2 + $0x19] sm:$0xff]  ;;  %v593_v30 = vld [vmem:[#allocation2 + $0x11] sm:$0xff]  ;;  %v722_v13 = vld [vmem:[%s1173_s29 + $0x28] sm:$0xff] }
 0x143   : > { %v599_v31 = vld [vmem:[#allocation2 + $0x1a] sm:$0xff]  ;;  %v598_v32 = vld [vmem:[#allocation2 + $0x12] sm:$0xff] }
 0x144   : > { %v613_v34 = vld [vmem:[#allocation2 + $0x15] sm:$0xff]  ;;  %v607_v49 = vld [vmem:[#allocation2 + $0xc] sm:$0xff]  ;;  %v721_v26 = vld [vmem:[%s1173_s29 + $0x20] sm:$0xff] }
 0x145   : > { %663 = vrot.lane.b32.xlu1 %v602_v27, %s1098_s0  ;;  %v603_v36 = vld [vmem:[#allocation2 + $0x13] sm:$0xff] }
 0x146   : > { %661 = vrot.lane.b32.xlu0 %v601_v28, %s1098_s0  ;;  %v608_v16 = vld [vmem:[#allocation2 + $0x14] sm:$0xff] }
 0x147   : > { %v589_v20 = vld [vmem:[#allocation2 + $0x18] sm:$0xff]  ;;  %v588_v2 = vld [vmem:[#allocation2 + $0x10] sm:$0xff] }
 0x148   : > { %v614_v33 = vld [vmem:[#allocation2 + $0x1d] sm:$0xff]  ;;  %v615_v40 = vld [vmem:[#allocation2 + $0x25] sm:$0xff]  ;;  %v723_v25 = vld [vmem:[%s1173_s29 + $0x30] sm:$0xff] }
 0x149   : > { %627 = vrot.lane.b32.xlu1 %v594_v29, %s1097_s15  ;;  %v604_v35 = vld [vmem:[#allocation2 + $0x1b] sm:$0xff]  ;;  %v605_v39 = vld [vmem:[#allocation2 + $0x23] sm:$0xff] }
 0x14a   : > { %625 = vrot.lane.b32.xlu0 %v593_v30, %s1097_s15  ;;  %v600_v37 = vld [vmem:[#allocation2 + $0x22] sm:$0xff] }
 0x14b   : > { %v595_v38 = vld [vmem:[#allocation2 + $0x21] sm:$0xff] }
 0x14c   : > { %v609_v14 = vld [vmem:[#allocation2 + $0x1c] sm:$0xff] }
 0x14d   : > { %647 = vrot.lane.b32.xlu1 %v599_v31, %s1096_s26 }
 0x14e   : > { %645 = vrot.lane.b32.xlu0 %v598_v32, %s1096_s26 }
 0x151   : > { %687 = vrot.lane.b32.xlu1 %v614_v33, %s1097_s15 }
 0x152   : > { %685 = vrot.lane.b32.xlu0 %v613_v34, %s1097_s15 }
 0x155   : > { %667 = vrot.lane.b32.xlu1 %v604_v35, %s1098_s0 }
 0x156   : > { %665 = vrot.lane.b32.xlu0 %v603_v36, %s1098_s0 }
 0x159   : > { %649 = vrot.lane.b32.xlu1 %v600_v37, %s1096_s26  ;;  %v590_v37 = vld [vmem:[#allocation2 + $0x20] sm:$0xff] }
 0x15a   : > { %629 = vrot.lane.b32.xlu0 %v595_v38, %s1097_s15 }
 0x15d   : > { %669 = vrot.lane.b32.xlu1 %v605_v39, %s1098_s0 }
 0x15e   : > { %689 = vrot.lane.b32.xlu0 %v615_v40, %s1097_s15 }
 0x1ab   : > { %v642_v41 = vpop.permute.xlu1 %641 }
 0x1ac   : > { %v622_v42 = vpop.permute.xlu0 %621 }
 0x1ad   : > { %v696_v53 = vsel %vm580_vm3, %v586_v45, %v622_v42  ;;  %v726_v42 = vld [vmem:[%s1173_s29 + $0x48] sm:$0xff] }
 0x1ae   : > { %v701_v0 = vsel %vm509_vm2, %v696_v53, %v642_v41  ;;  %v725_v41 = vld [vmem:[%s1173_s29 + $0x40] sm:$0xff] }
 0x1af   : > { %v644_v43 = vpop.permute.xlu1 %643  ;;  %v610_v45 = vld [vmem:[#allocation2 + $0x24] sm:$0xff]  ;;  %v1012_v53 = vld [vmem:[%s1438_s7] ss:$0 sm:$0xff] }
 0x1b0   : > { %v624_v44 = vpop.permute.xlu0 %623 }
 0x1b1   : > { %v697_v54 = vsel %vm580_vm3, %v587_v48, %v624_v44 }
 0x1b2   : > { %v702_v62 = vsel %vm509_vm2, %v697_v54, %v644_v43 }
 0x1b3   : > { %v684_v50 = vpop.permute.xlu1 %683 }
 0x1b4   : > { %v682_v52 = vpop.permute.xlu0 %681  ;;  %v713_v55 = vsel %vm580_vm3, %v607_v49, %v684_v50 }
 0x1b5   : > { %v712_v56 = vsel %vm580_vm3, %v606_v51, %v682_v52  ;;  %v730_v57 = vmul.f32 %v720_v46, %v713_v55  ;;  %v916_v55 = vld [vmem:[%s1163_s21] sm:$0xff] }
 0x1b6   : > { %v728_v58 = vmul.f32 %v718_v47, %v712_v56 }
 0x1b7   : > { %v664_v61 = vpop.permute.xlu1 %663 }
 0x1b8   : > { %v662_v63 = vpop.permute.xlu0 %661  ;;  %v738_v1 = vpack.c.bf16 %v730_v57, %v728_v58  ;;  %v708_v3 = vsel %vm706_vm4, %v702_v62, %v664_v61  ;;  %v911_v58 = vld [vmem:[%s1440_s9] sm:$0xff] }
 0x1b9   : > { %v707_v4 = vsel %vm706_vm4, %v701_v0, %v662_v63  ;;  %v729_v5 = vmul.f32 %v719_v59, %v708_v3  ;;  %v912_v0 = vld [vmem:[%s1440_s9 + $0x8] sm:$0xff] }
 0x1ba   : > { %v727_v6 = vmul.f32 %v717_v60, %v707_v4  ;;  %1025 = vmatprep.mubr.msk.bf16.mxu1 %vm509_vm2, %v738_v1  ;;  %v917_v60 = vld [vmem:[%s1163_s21 + $0x8] sm:$0xff] }
 0x1bb   : > { %v628_v7 = vpop.permute.xlu1 %627 }
 0x1bc   : > { %v626_v8 = vpop.permute.xlu0 %625  ;;  %v737_v9 = vpack.c.bf16 %v729_v5, %v727_v6  ;;  %v699_v23 = vsel %vm580_vm3, %v589_v20, %v628_v7  ;;  %v918_v6 = vld [vmem:[%s1163_s21 + $0x10] sm:$0xff]  ;;  %v920_v20 = vld [vmem:[%s1163_s21 + $0x20] sm:$0xff] }
 0x1bd   : > { %v698_v24 = vsel %vm580_vm3, %v588_v2, %v626_v8 }
 0x1be   : > { %888 = vmatmul.mubr.bf16.vlgmr.msra.gmra.mrb[0].mxu1 %v737_v9  ;;  %v913_v9 = vld [vmem:[%s1440_s9 + $0x10] sm:$0xff] }
 0x1bf   : > { %v648_v10 = vpop.permute.xlu1 %647 }
 0x1c0   : > { %v646_v11 = vpop.permute.xlu0 %645  ;;  %v704_v27 = vsel %vm509_vm2, %v699_v23, %v648_v10 }
 0x1c1   : > { %v703_v28 = vsel %vm509_vm2, %v698_v24, %v646_v11  ;;  %v919_v11 = vld [vmem:[%s1163_s21 + $0x18] sm:$0xff] }
 0x1c3   : > { %v688_v15 = vpop.permute.xlu1 %687 }
 0x1c4   : > { %v686_v17 = vpop.permute.xlu0 %685  ;;  %v715_v18 = vsel %vm580_vm3, %v609_v14, %v688_v15  ;;  %v914_v15 = vld [vmem:[%s1440_s9 + $0x18] sm:$0xff] }
 0x1c5   : > { %v714_v19 = vsel %vm580_vm3, %v608_v16, %v686_v17  ;;  %v734_v21 = vmul.f32 %v724_v12, %v715_v18 }
 0x1c6   : > { %v732_v22 = vmul.f32 %v722_v13, %v714_v19 }
 0x1c7   : > { %v668_v30 = vpop.permute.xlu1 %667 }
 0x1c8   : > { %v740_v29 = vpack.c.bf16 %v734_v21, %v732_v22  ;;  %v666_v31 = vpop.permute.xlu0 %665  ;;  %v710_v32 = vsel %vm706_vm4, %v704_v27, %v668_v30  ;;  %v915_v22 = vld [vmem:[%s1440_s9 + $0x20] sm:$0xff] }
 0x1c9   : > { %v709_v33 = vsel %vm706_vm4, %v703_v28, %v666_v31  ;;  %v733_v34 = vmul.f32 %v723_v25, %v710_v32 }
 0x1ca   : > { %v731_v35 = vmul.f32 %v721_v26, %v709_v33  ;;  %1026 = vmatprep.mubr.msk.bf16.mxu1 %vm509_vm2, %v740_v29 }
 0x1cb   : > { %v650_v36 = vpop.permute.xlu1 %649 }
 0x1cc   : > { %v630_v38 = vpop.permute.xlu0 %629  ;;  %v739_v39 = vpack.c.bf16 %v733_v34, %v731_v35 }
 0x1cd   : > { %v700_v40 = vsel %vm580_vm3, %v590_v37, %v630_v38 }
 0x1ce   : > { %896 = vmatmul.mubr.bf16.gmra.mrb[4].mxu1 %v739_v39  ;;  %v705_v44 = vsel %vm509_vm2, %v700_v40, %v650_v36 }
 0x1cf   : > { %v670_v43 = vpop.permute.xlu1 %669 }
 0x1d0   : > { %v690_v46 = vpop.permute.xlu0 %689  ;;  %v711_v47 = vsel %vm706_vm4, %v705_v44, %v670_v43 }
 0x1d1   : > { %v716_v48 = vsel %vm580_vm3, %v610_v45, %v690_v46  ;;  %v735_v49 = vmul.f32 %v725_v41, %v711_v47 }
 0x1d2   : > { %v736_v50 = vmul.f32 %v726_v42, %v716_v48 }
 0x1d3   : > { %v741_v51 = vpack.c.bf16 %v735_v49, %v735_v49 }
 0x1d4   : > { %v742_v52 = vpack.c.bf16 %v736_v50, %v736_v50 }
 0x1d6   : > { %1027 = vmatprep.mubr.msk.bf16.mxu1 %vm509_vm2, %v742_v52 }
 0x1d7   : > { %904 = vmatmul.mubr.bf16.gmra.mrb[8].mxu1 %v741_v51 }
 0x291   : > { %v889_v54 = vpop.f32.mrb[0].mxu1 }
 0x292   : > { %v890_v56 = vadd.f32 %v1012_v53, %v889_v54  ;;  %v891_v57 = vpop.f32.mrb[1].mxu1 }
 0x293   : > { %v892_v59 = vpop.f32.mrb[2].mxu1 }
 0x294   : > { %v921_v61 = vmul.f32 %v916_v55, %v890_v56  ;;  %v893_v62 = vadd.f32 %v1012_v53, %v892_v59  ;;  %v894_v63 = vpop.f32.mrb[3].mxu1 }
 0x296   : > { %v926_v1 = vadd.f32 %v921_v61, %v911_v58  ;;  %v922_v3 = vmul.f32 %v917_v60, %v893_v62 }
 0x298   : > { %931 = vst.msk [vmem:[%s1440_s9] sm:$0xff] %vm580_vm3, %v926_v1  ;;  %v927_v4 = vadd.f32 %v922_v3, %v912_v0 }
 0x29a   : > { %932 = vst.msk [vmem:[%s1440_s9 + $0x8] sm:$0xff] %vm580_vm3, %v927_v4 }
 0x2a1   : > { %v897_v5 = vpop.f32.mrb[4].mxu1 }
 0x2a2   : > { %v898_v7 = vadd.f32 %v1012_v53, %v897_v5  ;;  %v899_v8 = vpop.f32.mrb[5].mxu1 }
 0x2a3   : > { %v900_v10 = vpop.f32.mrb[6].mxu1 }
 0x2a4   : > { %v923_v12 = vmul.f32 %v918_v6, %v898_v7  ;;  %v901_v13 = vadd.f32 %v1012_v53, %v900_v10  ;;  %v902_v14 = vpop.f32.mrb[7].mxu1 }
 0x2a6   : > { %v928_v16 = vadd.f32 %v923_v12, %v913_v9  ;;  %v924_v17 = vmul.f32 %v919_v11, %v901_v13 }
 0x2a8   : > { %933 = vst.msk [vmem:[%s1440_s9 + $0x10] sm:$0xff] %vm580_vm3, %v928_v16  ;;  %v929_v18 = vadd.f32 %v924_v17, %v914_v15 }
 0x2aa   : > { %934 = vst.msk [vmem:[%s1440_s9 + $0x18] sm:$0xff] %vm580_vm3, %v929_v18  ;;  %v905_v19 = vpop.f32.mrb[8].mxu1 }
 0x2ab   : > { %v906_v2 = vadd.f32 %v1012_v53, %v905_v19  ;;  %v907_v21 = vpop.f32.mrb[9].mxu1 }
 0x2ac   : > { %v908_v23 = vpop.f32.mrb[10].mxu1 }
 0x2ad   : > { %v925_v24 = vmul.f32 %v920_v20, %v906_v2  ;;  %v909_v25 = vpop.f32.mrb[11].mxu1 }
 0x2af   : > { %v930_v26 = vadd.f32 %v925_v24, %v915_v22 }
 0x2b1   : > { %935 = vst.msk [vmem:[%s1440_s9 + $0x20] sm:$0xff] %vm580_vm3, %v930_v26 }
 0x2b2 PF: > { %s25_s14 = sadd.s32 1, %s1091_s14  }
 0x2b3   : > { %p22_p12 = scmp.ge.s32.totalorder %s25_s14, 4  }
 0x2b5   :  { %24 = sbr.rel (!%p22_p12) target bundleno = 16 (0x10), region = 88 }

</bundles_post_ra>
